<compile_context>
chip_gen: v7x
topology: tpu7x:2x2x1
jax: 0.10.0
libtpu: 0.0.40
codegen_flags: <defaults>
</compile_context>

<pallas_src>
import functools
import math

import jax
import jax.numpy as jnp
from jax.experimental import pallas as pl
from jax.experimental.pallas import tpu as pltpu

TOTAL_TIME_STEPS = 1000
TIME_EMB_DIMS = 128
TIME_EMB_DIMS_EXP = 512


def _sinpos_mlp_kernel(t_ref, w1_ref, b_ref, w2_ref, out_ref,
                       *, half_dim, log_scale):
    # t_ref:   (tb, 1)              int32 timesteps
    # w1_ref:  (2*half_dim, D_exp)  bf16
    # b_ref:   (2, D_exp)           f32   (row 0 = b1, row 1 = b2)
    # w2_ref:  (D_exp, D_exp)       bf16
    # out_ref: (tb, D_exp)          f32
    t = t_ref[...].astype(jnp.float32)                                   # (tb, 1)

    emb_dim = 2 * half_dim
    lane = jax.lax.broadcasted_iota(jnp.int32, (1, emb_dim), 1)          # (1, 128)
    # Column j holds freq index j for j < half_dim, and j - half_dim otherwise
    # (pure VPU select; avoids an integer mod and any lane shuffle).
    k = jnp.where(lane < half_dim, lane, lane - half_dim).astype(jnp.float32)
    freqs = jnp.exp(k * (-log_scale))                                    # (1, 128)
    args = t * freqs                                                     # (tb, 128)

    # Lane-interleaved [sin(args[:, :H]) | cos(args[:, :H])] built with a VPU
    # select -- identical to torch.cat((emb.sin(), emb.cos()), dim=-1).
    emb = jnp.where(lane < half_dim, jnp.sin(args), jnp.cos(args)).astype(jnp.bfloat16)

    b1 = b_ref[0:1, :]
    b2 = b_ref[1:2, :]

    # Linear 1 (single K=128 matmul), SiLU in f32, Linear 2.
    h = jnp.dot(emb, w1_ref[...], preferred_element_type=jnp.float32) + b1
    h = h * jax.nn.sigmoid(h)                                            # SiLU
    out = jnp.dot(h.astype(jnp.bfloat16), w2_ref[...],
                  preferred_element_type=jnp.float32) + b2
    out_ref[...] = out.astype(out_ref.dtype)


def prepare_params(w1, b1, w2, b2):
    """One-time conversion of f32 module parameters into the kernel layout.

    Hoist this out of the per-step loop: big matrices are cast to bf16 once,
    biases are packed into a single (2, D_exp) f32 array.
    Weights are stored (in_features, out_features).
    """
    return {
        "w1": w1.astype(jnp.bfloat16),                       # (128, 512)
        "b": jnp.stack([b1, b2], axis=0).astype(jnp.float32),  # (2, 512)
        "w2": w2.astype(jnp.bfloat16),                        # (512, 512)
    }


def sinusoidal_position_embeddings(time, params, *, time_emb_dims=TIME_EMB_DIMS,
                                   block_b=1024):
    """time: (B,) int timestep indices -> (B, time_emb_dims_exp) f32."""
    w1, b, w2 = params["w1"], params["b"], params["w2"]
    half_dim = time_emb_dims // 2
    log_scale = math.log(10000.0) / (half_dim - 1)
    d_exp = w2.shape[1]

    t = jnp.atleast_1d(time).astype(jnp.int32).reshape(-1, 1)            # (B, 1)
    B = t.shape[0]
    tb = B if B <= block_b else block_b                                  # row tile
    grid = (pl.cdiv(B, tb),)

    kernel = functools.partial(_sinpos_mlp_kernel,
                               half_dim=half_dim, log_scale=log_scale)

    flops = 2 * B * (2 * half_dim * d_exp + d_exp * d_exp)
    transcendentals = B * (4 * half_dim + d_exp) + 2 * half_dim  # sin, cos, sigmoid, freqs
    bytes_accessed = ((w1.size + w2.size) * 2                    # bf16 weights
                      + b.size * 4                               # f32 biases
                      + t.size * 4 + B * d_exp * 4)              # in/out activations

    return pl.pallas_call(
        kernel,
        out_shape=jax.ShapeDtypeStruct((B, d_exp), jnp.float32),
        grid=grid,
        in_specs=[
            pl.BlockSpec((tb, 1), lambda i: (i, 0)),            # timesteps (tiled rows)
            pl.BlockSpec(w1.shape, lambda i: (0, 0)),           # weights: constant block
            pl.BlockSpec(b.shape, lambda i: (0, 0)),            #   -> stay VMEM-resident
            pl.BlockSpec(w2.shape, lambda i: (0, 0)),
        ],
        out_specs=pl.BlockSpec((tb, d_exp), lambda i: (i, 0)),
        # With block_b >= B the grid is (1,), so this is a no-op; it only
        # shards rows across TensorCores once B is large enough that per-core
        # compute dominates the (duplicated) weight DMA.
        compiler_params=pltpu.CompilerParams(dimension_semantics=("parallel",)),
        cost_estimate=pl.CostEstimate(flops=flops,
                                      transcendentals=transcendentals,
                                      bytes_accessed=bytes_accessed),
    )(t, w1, b, w2)


# ----------------------------- references ---------------------------------

def _reference_f32(time, w1, b1, w2, b2, time_emb_dims=TIME_EMB_DIMS,
                   total_time_steps=TOTAL_TIME_STEPS):
    """Plain-JAX f32 reference mirroring the PyTorch module (table + gather)."""
    half_dim = time_emb_dims // 2
    scale = math.log(10000.0) / (half_dim - 1)
    freqs = jnp.exp(jnp.arange(half_dim, dtype=jnp.float32) * -scale)
    ts = jnp.arange(total_time_steps, dtype=jnp.float32)
    table = ts[:, None] * freqs[None, :]
    table = jnp.concatenate([jnp.sin(table), jnp.cos(table)], axis=-1)   # (1000, 128)
    emb = table[time]
    h = emb @ w1 + b1
    h = h * jax.nn.sigmoid(h)
    return h @ w2 + b2


def _reference_mixed(time, params, time_emb_dims=TIME_EMB_DIMS):
    """Plain-JAX reference using the same bf16 weights / f32 accumulation."""
    half_dim = time_emb_dims // 2
    scale = math.log(10000.0) / (half_dim - 1)
    freqs = jnp.exp(jnp.arange(half_dim, dtype=jnp.float32) * -scale)
    args = time.astype(jnp.float32)[:, None] * freqs[None, :]
    emb = jnp.concatenate([jnp.sin(args), jnp.cos(args)], axis=-1).astype(jnp.bfloat16)
    b1 = params["b"][0:1, :]
    b2 = params["b"][1:2, :]
    h = jnp.dot(emb, params["w1"], preferred_element_type=jnp.float32) + b1
    h = h * jax.nn.sigmoid(h)
    return jnp.dot(h.astype(jnp.bfloat16), params["w2"],
                   preferred_element_type=jnp.float32) + b2


if __name__ == "__main__":
    key = jax.random.PRNGKey(0)
    k_t, k_w1, k_b1, k_w2, k_b2 = jax.random.split(key, 5)

    B = 8
    time = jax.random.randint(k_t, (B,), 0, TOTAL_TIME_STEPS, dtype=jnp.int32)

    # Deterministic f32 parameter init (weights stored as (in, out)).
    w1 = jax.random.normal(k_w1, (TIME_EMB_DIMS, TIME_EMB_DIMS_EXP), jnp.float32) * (
        1.0 / math.sqrt(TIME_EMB_DIMS))
    b1 = jax.random.normal(k_b1, (TIME_EMB_DIMS_EXP,), jnp.float32) * 0.01
    w2 = jax.random.normal(k_w2, (TIME_EMB_DIMS_EXP, TIME_EMB_DIMS_EXP), jnp.float32) * (
        1.0 / math.sqrt(TIME_EMB_DIMS_EXP))
    b2 = jax.random.normal(k_b2, (TIME_EMB_DIMS_EXP,), jnp.float32) * 0.01

    # One-time bf16 cast / bias packing -- hoisted out of the step loop.
    params = prepare_params(w1, b1, w2, b2)

    out = sinusoidal_position_embeddings(time, params)
    out = jax.block_until_ready(out)
    assert out.shape == (B, TIME_EMB_DIMS_EXP)

    # Tight check against a reference in the same (bf16 weight, f32 accum) regime.
    ref_mixed = _reference_mixed(time, params)
    assert jnp.allclose(out, ref_mixed, atol=5e-3, rtol=5e-3), \
        "mismatch vs mixed-precision reference"

    # Semantics check against the original f32 module math; tolerance reflects
    # the deliberate bf16 weight/activation quantization (f32 accumulation).
    ref_f32 = _reference_f32(time, w1, b1, w2, b2)
    assert jnp.allclose(out, ref_f32, atol=2.5e-2, rtol=2.5e-2), \
        "mismatch vs f32 module reference"

    print("KERNEL_OK")
</pallas_src>

<mosaic_0001>
module attributes {stable_mosaic.version = 11 : i64} {
  func.func @_sinpos_mlp_kernel(%arg0: i32, %arg1: memref<8x1xi32, #tpu.memory_space<vmem>>, %arg2: memref<128x512xbf16, #tpu.memory_space<vmem>>, %arg3: memref<2x512xf32, #tpu.memory_space<vmem>>, %arg4: memref<512x512xbf16, #tpu.memory_space<vmem>>, %arg5: memref<8x512xf32, #tpu.memory_space<vmem>>) attributes {dimension_semantics = [#tpu.dimension_semantics<parallel>], iteration_bounds = array<i64: 1>, scalar_prefetch = 0 : i64, scratch_operands = 0 : i64, tpu.core_type = #tpu.core_type<tc>, window_params = [{transform_indices = @transform_0, window_bounds = array<i64: 8, 1>}, {pipeline_mode = #tpu.pipeline_mode<synchronous>, transform_indices = @transform_1, window_bounds = array<i64: 128, 512>}, {pipeline_mode = #tpu.pipeline_mode<synchronous>, transform_indices = @transform_2, window_bounds = array<i64: 2, 512>}, {pipeline_mode = #tpu.pipeline_mode<synchronous>, transform_indices = @transform_3, window_bounds = array<i64: 512, 512>}, {transform_indices = @transform_4, window_bounds = array<i64: 8, 512>}]} {
    %c0 = arith.constant 0 : index
    %c0_0 = arith.constant 0 : index
    %0 = vector.load %arg1[%c0, %c0_0] : memref<8x1xi32, #tpu.memory_space<vmem>>, vector<8x1xi32>
    %1 = arith.sitofp %0 : vector<8x1xi32> to vector<8x1xf32>
    %2 = tpu.iota {dimensions = array<i32: 1>} : vector<1x128xi32>
    %c64_i32 = arith.constant 64 : i32
    %3 = vector.broadcast %c64_i32 : i32 to vector<1x128xi32>
    %4 = arith.cmpi slt, %2, %3 : vector<1x128xi32>
    %c64_i32_1 = arith.constant 64 : i32
    %5 = vector.broadcast %c64_i32_1 : i32 to vector<1x128xi32>
    %6 = arith.subi %2, %5 : vector<1x128xi32>
    %7 = arith.select %4, %2, %6 : vector<1x128xi1>, vector<1x128xi32>
    %8 = arith.sitofp %7 : vector<1x128xi32> to vector<1x128xf32>
    %cst = arith.constant -0.146195874 : f32
    %9 = vector.broadcast %cst : f32 to vector<1x128xf32>
    %10 = arith.mulf %8, %9 : vector<1x128xf32>
    %11 = math.exp %10 : vector<1x128xf32>
    %12 = vector.broadcast %1 : vector<8x1xf32> to vector<8x128xf32>
    %13 = vector.broadcast %11 : vector<1x128xf32> to vector<8x128xf32>
    %14 = arith.mulf %12, %13 : vector<8x128xf32>
    %c64_i32_2 = arith.constant 64 : i32
    %15 = vector.broadcast %c64_i32_2 : i32 to vector<1x128xi32>
    %16 = arith.cmpi slt, %2, %15 : vector<1x128xi32>
    %17 = math.sin %14 : vector<8x128xf32>
    %18 = math.cos %14 : vector<8x128xf32>
    %19 = vector.shape_cast %16 : vector<1x128xi1> to vector<1x128xi1>
    %20 = vector.broadcast %19 : vector<1x128xi1> to vector<8x128xi1>
    %21 = arith.select %20, %17, %18 : vector<8x128xi1>, vector<8x128xf32>
    %22 = arith.truncf %21 : vector<8x128xf32> to vector<8x128xbf16>
    %c0_3 = arith.constant 0 : index
    %c0_4 = arith.constant 0 : index
    %23 = vector.load %arg3[%c0_3, %c0_4] : memref<2x512xf32, #tpu.memory_space<vmem>>, vector<1x512xf32>
    %c1 = arith.constant 1 : index
    %c0_5 = arith.constant 0 : index
    %24 = vector.load %arg3[%c1, %c0_5] : memref<2x512xf32, #tpu.memory_space<vmem>>, vector<1x512xf32>
    %c0_6 = arith.constant 0 : index
    %c0_7 = arith.constant 0 : index
    %25 = vector.load %arg2[%c0_6, %c0_7] : memref<128x512xbf16, #tpu.memory_space<vmem>>, vector<128x512xbf16>
    %cst_8 = arith.constant dense<0.000000e+00> : vector<8x512xf32>
    %26 = tpu.matmul %22, %25, %cst_8 {dimension_numbers = #tpu.dot_dimension_numbers<[1], [0], [0], [1], [0, 0, 1, 1], [], []>} : vector<8x128xbf16>, vector<128x512xbf16>, vector<8x512xf32> -> vector<8x512xf32>
    %27 = vector.broadcast %23 : vector<1x512xf32> to vector<8x512xf32>
    %28 = arith.addf %26, %27 : vector<8x512xf32>
    %29 = arith.negf %28 : vector<8x512xf32>
    %30 = math.exp %29 : vector<8x512xf32>
    %cst_9 = arith.constant 1.000000e+00 : f32
    %31 = vector.broadcast %cst_9 : f32 to vector<8x512xf32>
    %32 = arith.addf %31, %30 : vector<8x512xf32>
    %33 = arith.divf %31, %32 : vector<8x512xf32>
    %34 = arith.mulf %28, %33 : vector<8x512xf32>
    %35 = arith.truncf %34 : vector<8x512xf32> to vector<8x512xbf16>
    %c0_10 = arith.constant 0 : index
    %c0_11 = arith.constant 0 : index
    %36 = vector.load %arg4[%c0_10, %c0_11] : memref<512x512xbf16, #tpu.memory_space<vmem>>, vector<512x512xbf16>
    %cst_12 = arith.constant dense<0.000000e+00> : vector<8x512xf32>
    %37 = tpu.matmul %35, %36, %cst_12 {dimension_numbers = #tpu.dot_dimension_numbers<[1], [0], [0], [1], [0, 0, 1, 1], [], []>} : vector<8x512xbf16>, vector<512x512xbf16>, vector<8x512xf32> -> vector<8x512xf32>
    %38 = vector.broadcast %24 : vector<1x512xf32> to vector<8x512xf32>
    %39 = arith.addf %37, %38 : vector<8x512xf32>
    %c0_13 = arith.constant 0 : index
    %c0_14 = arith.constant 0 : index
    %40 = vector.load %arg5[%c0_13, %c0_14] : memref<8x512xf32, #tpu.memory_space<vmem>>, vector<8x512xf32>
    tpu.vector_store %arg5[%c0_13, %c0_14], %39 {strides = array<i32>} : memref<8x512xf32, #tpu.memory_space<vmem>>, vector<8x512xf32>,
    return
  }
  func.func @transform_0(%arg0: i32) -> (i32, i32) {
    %c0_i32 = arith.constant 0 : i32
    %c0_i32_0 = arith.constant 0 : i32
    return %arg0, %c0_i32 : i32, i32
  }
  func.func @transform_1(%arg0: i32) -> (i32, i32) {
    %c0_i32 = arith.constant 0 : i32
    %c0_i32_0 = arith.constant 0 : i32
    %c0_i32_1 = arith.constant 0 : i32
    return %c0_i32, %c0_i32_0 : i32, i32
  }
  func.func @transform_2(%arg0: i32) -> (i32, i32) {
    %c0_i32 = arith.constant 0 : i32
    %c0_i32_0 = arith.constant 0 : i32
    %c0_i32_1 = arith.constant 0 : i32
    return %c0_i32, %c0_i32_0 : i32, i32
  }
  func.func @transform_3(%arg0: i32) -> (i32, i32) {
    %c0_i32 = arith.constant 0 : i32
    %c0_i32_0 = arith.constant 0 : i32
    %c0_i32_1 = arith.constant 0 : i32
    return %c0_i32, %c0_i32_0 : i32, i32
  }
  func.func @transform_4(%arg0: i32) -> (i32, i32) {
    %c0_i32 = arith.constant 0 : i32
    %c0_i32_0 = arith.constant 0 : i32
    return %arg0, %c0_i32 : i32, i32
  }
}

</mosaic_0001>

<bundles_post_ra>
// kernel: tpu_custom_call.1
= control target key start
LH: loop header
LB: loop body
LE: loop exit
PB: predicated region body
PF: predicated region fallthrough
CT: control target
= control target key end

     0   :  { %9 = vsyncpa [#allocation3], 0  ;;  %s2264_s0 = inlined_call_operand.vmem [shape: s32[8,1], index: 0, kind: input, shape index: {}]   ;;  %s2265_s1 = inlined_call_operand.hbm [shape: bf16[128,512], index: 1, kind: input, shape index: {}]   ;;  %s2266_s2 = inlined_call_operand.vmem [shape: f32[2,512], index: 2, kind: input, shape index: {}]   ;;  %s2267_s3 = inlined_call_operand.hbm [shape: bf16[512,512], index: 3, kind: input, shape index: {}]   ;;  %s2268_s4 = inlined_call_operand.hbm [shape: f32[8,512], index: 4, kind: output, shape index: {}]  }
   0x1   :  { %10 = vsyncpa [#allocation6], 0 }
   0x2   :  { %11 = vsyncpa [#allocation4], 0  ;;  %s2115_s15 = smov [#allocation2]   ;;  %s2043_s19 = scalar_lea.hbm %s2265_s1, 4096 }
   0x3   :  { %s19_s16 = sshll.u32 %s2115_s15, 4  ;;  %p2044_p0 = scmp.ne.s32.totalorder %s2265_s1, %s2043_s19  ;;  %s20_s16 = int_to_ptr.vmem [resolvable:$true] %s19_s16 }
   0x4   :  { %p2047_p1 = scmp.lt.u32.totalorder %s2043_s19, %s2265_s1 }
   0x6   :  { %p2049_p2 = pnand %p2047_p1, %p2044_p0 }
   0x8   :  { %2052 = shalt.err (!%p2049_p2)
}
   0x9   :  { %s2053_s24 = scalar_lea.vmem %s20_s16, 4096  ;;  %p2058_p4 = scmp.lt.s32.totalorder %s20_s16, %s20_s16 }
   0xa   :  { %p2054_p3 = scmp.ne.s32.totalorder %s20_s16, %s2053_s24  ;;  %p2059_p5 = scmp.lt.s32.totalorder %s2053_s24, %s2053_s24 }
   0xc   :  { %p2060_p6 = por %p2059_p5, %p2058_p4 }
   0xe   :  { %p2061_p7 = pnand %p2060_p6, %p2054_p3 }
  0x10   :  { %2064 = shalt.err (!%p2061_p7)
}
  0x11   :  { %s2116_s25 = smov 256   ;;  %s2117_s26 = smov 16  }
  0x12   :  { %25 = dma.hbm_to_vmem [thread:$0]  %s2265_s1, 4096, %s20_s16, [#allocation3], %s2116_s25, %s2116_s25, %s2117_s26  }
  0x13   :  { %s2118_s29 = smov [#allocation5]   ;;  %s2065_s7 = scalar_lea.hbm %s2267_s3, 16384 }
  0x14   :  { %s33_s30 = sshll.u32 %s2118_s29, 4  ;;  %p2066_p8 = scmp.ne.s32.totalorder %s2267_s3, %s2065_s7  ;;  %s34_s30 = int_to_ptr.vmem [resolvable:$true] %s33_s30 }
  0x15   :  { %p2069_p9 = scmp.lt.u32.totalorder %s2065_s7, %s2267_s3 }
  0x17   :  { %p2071_p10 = pnand %p2069_p9, %p2066_p8 }
  0x19   :  { %2074 = shalt.err (!%p2071_p10)
}
  0x1a   :  { %s2075_s12 = scalar_lea.vmem %s34_s30, 16384  ;;  %p2080_p12 = scmp.lt.s32.totalorder %s34_s30, %s34_s30 }
  0x1b   :  { %p2076_p11 = scmp.ne.s32.totalorder %s34_s30, %s2075_s12  ;;  %p2081_p13 = scmp.lt.s32.totalorder %s2075_s12, %s2075_s12 }
  0x1d   :  { %p2082_p0 = por %p2081_p13, %p2080_p12 }
  0x1f   :  { %p2083_p1 = pnand %p2082_p0, %p2076_p11 }
  0x21   :  { %2086 = shalt.err (!%p2083_p1)
}
  0x22   :  { %39 = dma.hbm_to_vmem [thread:$0]  %s2267_s3, 16384, %s34_s30, [#allocation6], %s2116_s25, %s2116_s25, %s2117_s26  }
  0x23   :  { %2109 = dma.done.wait [#allocation3], 4096  }
  0x24   :  { %2110 = vsyncadd [#allocation3], 4294963200 }
  0x25   :  { %2111 = dma.done.wait [#allocation6], 16384  }
  0x26   :  { %2112 = vsyncadd [#allocation6], 4294950912  ;;  %v2119_v0 = vmov 0   ;;  %v47_v1 = vld [vmem:[%s2264_s0] sm:$0xff]  ;;  %v1783_v4 = vld [vmem:[#allocation2 + $0xc] ss:$16 sps:$4 sm:$0xff]   ;;  %v49_v36 = vlaneseq }
  0x27   :  { %1780 = vset.pattern.permute.xlu0 %v2119_v0  ;;  %523 = vmatprep.mubr.bf16.mxu0 %v2119_v0  ;;  %v48_v2 = vcvt.s32.f32 %v47_v1  ;;  %v1781_v3 = vld [vmem:[#allocation2 + $0x4] ss:$16 sps:$4 sm:$0xff]   ;;  %v1785_v5 = vld [vmem:[#allocation2] ss:$16 sps:$4 sm:$0xff]   ;;  %v1786_v6 = vld [vmem:[#allocation2 + $0x8] ss:$16 sps:$4 sm:$0xff]  }
  0x28   :  { %564 = vmatprep.mubr.bf16.mxu1 %v2119_v0  ;;  %491 = vmatprep.subr.bf16.mxu0 %v1781_v3  ;;  %v1787_v7 = vld [vmem:[#allocation2 + $0x24] ss:$16 sps:$4 sm:$0xff]   ;;  %v1789_v8 = vld [vmem:[#allocation2 + $0x2c] ss:$16 sps:$4 sm:$0xff]   ;;  %v1791_v9 = vld [vmem:[#allocation2 + $0x20] ss:$16 sps:$4 sm:$0xff]  }
  0x29   :  { %60 = vperm.xlu0 %1780, %v48_v2   ;;  %532 = vmatprep.subr.bf16.mxu1 %v1783_v4  ;;  %v1792_v10 = vld [vmem:[#allocation2 + $0x28] ss:$16 sps:$4 sm:$0xff]   ;;  %v1793_v11 = vld [vmem:[#allocation2 + $0x44] ss:$16 sps:$4 sm:$0xff]   ;;  %v1795_v12 = vld [vmem:[#allocation2 + $0x4c] ss:$16 sps:$4 sm:$0xff]  }
  0x2a   :  { %492 = vmatpush1.bf16.msra.mxu0 %v1785_v5  ;;  %533 = vmatpush1.bf16.msra.mxu1 %v1786_v6  ;;  %v1797_v13 = vld [vmem:[#allocation2 + $0x40] ss:$16 sps:$4 sm:$0xff]   ;;  %v1798_v14 = vld [vmem:[#allocation2 + $0x48] ss:$16 sps:$4 sm:$0xff]   ;;  %v1799_v15 = vld [vmem:[#allocation2 + $0x64] ss:$16 sps:$4 sm:$0xff]  }
  0x2b   :  { %493 = vmatprep.subr.bf16.mxu0 %v1787_v7  ;;  %534 = vmatprep.subr.bf16.mxu1 %v1789_v8  ;;  %v1801_v16 = vld [vmem:[#allocation2 + $0x6c] ss:$16 sps:$4 sm:$0xff]   ;;  %v1803_v17 = vld [vmem:[#allocation2 + $0x60] ss:$16 sps:$4 sm:$0xff]   ;;  %v1804_v18 = vld [vmem:[#allocation2 + $0x68] ss:$16 sps:$4 sm:$0xff]  }
  0x2c   :  { %v1805_v19 = vld [vmem:[#allocation2 + $0x84] ss:$16 sps:$4 sm:$0xff]   ;;  %v1807_v20 = vld [vmem:[#allocation2 + $0x8c] ss:$16 sps:$4 sm:$0xff]   ;;  %v1809_v21 = vld [vmem:[#allocation2 + $0x80] ss:$16 sps:$4 sm:$0xff]  }
  0x2d   :  { %v1810_v22 = vld [vmem:[#allocation2 + $0x88] ss:$16 sps:$4 sm:$0xff]   ;;  %v1811_v23 = vld [vmem:[#allocation2 + $0xa4] ss:$16 sps:$4 sm:$0xff]   ;;  %v1813_v24 = vld [vmem:[#allocation2 + $0xac] ss:$16 sps:$4 sm:$0xff]  }
  0x2e   :  { %494 = vmatpush1.bf16.msra.mxu0 %v1791_v9  ;;  %535 = vmatpush1.bf16.msra.mxu1 %v1792_v10  ;;  %v1815_v25 = vld [vmem:[#allocation2 + $0xa0] ss:$16 sps:$4 sm:$0xff]   ;;  %v1816_v26 = vld [vmem:[#allocation2 + $0xa8] ss:$16 sps:$4 sm:$0xff]   ;;  %v1817_v27 = vld [vmem:[#allocation2 + $0xc4] ss:$16 sps:$4 sm:$0xff]  }
  0x2f   :  { %495 = vmatprep.subr.bf16.mxu0 %v1793_v11  ;;  %536 = vmatprep.subr.bf16.mxu1 %v1795_v12  ;;  %v1819_v28 = vld [vmem:[#allocation2 + $0xcc] ss:$16 sps:$4 sm:$0xff]   ;;  %v1821_v29 = vld [vmem:[#allocation2 + $0xc0] ss:$16 sps:$4 sm:$0xff]   ;;  %v1822_v30 = vld [vmem:[#allocation2 + $0xc8] ss:$16 sps:$4 sm:$0xff]  }
  0x30   :  { %v1823_v31 = vld [vmem:[#allocation2 + $0xe4] ss:$16 sps:$4 sm:$0xff]   ;;  %v1825_v32 = vld [vmem:[#allocation2 + $0xec] ss:$16 sps:$4 sm:$0xff]   ;;  %v1827_v33 = vld [vmem:[#allocation2 + $0xe0] ss:$16 sps:$4 sm:$0xff]  }
  0x31   :  { %v1828_v34 = vld [vmem:[#allocation2 + $0xe8] ss:$16 sps:$4 sm:$0xff]   ;;  %v1831_v35 = vld [vmem:[#allocation5 + $0x4] ss:$16 sps:$4 sm:$0xff]   ;;  %v1834_v37 = vld [vmem:[#allocation5 + $0xc] ss:$16 sps:$4 sm:$0xff]  }
  0x32   :  { %496 = vmatpush1.bf16.msra.mxu0 %v1797_v13  ;;  %537 = vmatpush1.bf16.msra.mxu1 %v1798_v14  ;;  %v2180_v38 = vand.u32 127, %v49_v36  ;;  %v2120_v57 = vmov 683565275   ;;  %v2121_v59 = vmov 2475754826   ;;  %s2126_s18 = smov [#allocation7]  }
  0x33   :  { %497 = vmatprep.subr.bf16.mxu0 %v1799_v15  ;;  %538 = vmatprep.subr.bf16.mxu1 %v1801_v16  ;;  %v2122_v62 = vmov 2131351028   ;;  %v2123_v1 = vmov 2102212464   ;;  %v2124_v4 = vmov 920167782  }
  0x34   :  { %v1578_v39 = vadd.s32 4294967232, %v2180_v38  ;;  %vm51_vm0 = vcmp.lt.s32.totalorder %v2180_v38, 64  ;;  %v2125_v7 = vmov 1326507024   ;;  %s1568_s19 = sshll.u32 %s2126_s18, 4  ;;  %s1569_s19 = int_to_ptr.vmem [resolvable:$true] %s1568_s19 }
  0x35   :  { %p2092_p3 = scmp.lt.s32.totalorder %s1569_s19, %s1569_s19 }
  0x36   :  { %498 = vmatpush1.bf16.msra.mxu0 %v1803_v17  ;;  %539 = vmatpush1.bf16.msra.mxu1 %v1804_v18  ;;  %v53_v40 = vsel %vm51_vm0, %v2180_v38, %v1578_v39  ;;  %v1844_v38 = vld [vmem:[#allocation5 + $0x48] ss:$16 sps:$4 sm:$0xff]  }
  0x37   :  { %499 = vmatprep.subr.bf16.mxu0 %v1805_v19  ;;  %540 = vmatprep.subr.bf16.mxu1 %v1807_v20  ;;  %v54_v41 = vcvt.s32.f32 %v53_v40 }
  0x39   :  { %v55_v42 = vmul.f32 -0.14619587, %v54_v41 }
  0x3a   :  { %500 = vmatpush1.bf16.msra.mxu0 %v1809_v21  ;;  %541 = vmatpush1.bf16.msra.mxu1 %v1810_v22 }
  0x3b   :  { %501 = vmatprep.subr.bf16.mxu0 %v1811_v23  ;;  %542 = vmatprep.subr.bf16.mxu1 %v1813_v24  ;;  %v56_v43 = vmul.f32 1.442695, %v55_v42 }
  0x3d   :  { %2021 = vpow2.f32 %v56_v43 }
  0x3e   :  { %502 = vmatpush1.bf16.msra.mxu0 %v1815_v25  ;;  %543 = vmatpush1.bf16.msra.mxu1 %v1816_v26 }
  0x3f   :  { %503 = vmatprep.subr.bf16.mxu0 %v1817_v27  ;;  %544 = vmatprep.subr.bf16.mxu1 %v1819_v28 }
  0x42   :  { %504 = vmatpush1.bf16.msra.mxu0 %v1821_v29  ;;  %545 = vmatpush1.bf16.msra.mxu1 %v1822_v30 }
  0x43   :  { %505 = vmatprep.subr.bf16.mxu0 %v1823_v31  ;;  %546 = vmatprep.subr.bf16.mxu1 %v1825_v32 }
  0x46   :  { %506 = vmatpush1.bf16.msra.mxu0 %v1827_v33  ;;  %547 = vmatpush1.bf16.msra.mxu1 %v1828_v34 }
  0x47   :  { %1394 = vmatprep.subr.bf16.mxu0 %v1831_v35  ;;  %1476 = vmatprep.subr.bf16.mxu1 %v1834_v37  ;;  %v2022_v44 = vpop.eup %2021 }
  0xa8   :  { %v61_v45 = vpop.permute.xlu0 %60 }
  0xa9   :  { %v2187_v46 = vmul.f32 %v2022_v44, %v61_v45 }
  0xab   :  { %v67_v47 = vand.u32 2139095040, %v2187_v46  ;;  %v64_v51 = vand.u32 2147483647, %v2187_v46  ;;  %vm66_vm8 = vcmp.lt.s32.totalorder %v2187_v46, 0 }
  0xad   :  { %v68_v48 = vshrl.u32 %v67_v47, 23  ;;  %v71_v54 = vand.u32 8388607, %v64_v51  ;;  %vm65_vm9 = vcmp.le.f32.partialorder %v64_v51, 0.7853982 }
  0xaf   :  { %v1579_v49 = vadd.s32 4294967169, %v68_v48  ;;  %v72_v9 = vor.u32 8388608, %v71_v54 }
  0xb1   :  { %v74_v50 = vadd.s32 1, %v1579_v49  ;;  %v112_v23 = vshll.u32 %v72_v9, 8 }
  0xb3   :  { %vm75_vm1 = vcmp.gt.s32.totalorder %v74_v50, 0 }
  0xb4   :  { %v76_v52 = vsel %vm75_vm1, %v74_v50, 0  ;;  %vm156_vm1 = vweird.f32 %v2187_v46 }
  0xb5   :  { %v78_v53 = vand.u32 31, %v76_v52  ;;  %v77_v56 = vshrl.u32 %v76_v52, 5 }
  0xb7   :  { %v79_v55 = vsub.s32 32, %v78_v53  ;;  %v81_v58 = vshll.u32 %v2120_v57, %v78_v53  ;;  %v84_v60 = vshll.u32 %v2121_v59, %v78_v53  ;;  %v87_v0 = vshll.u32 %v2122_v62, %v78_v53 }
  0xb8   :  { %v90_v3 = vshll.u32 %v2123_v1, %v78_v53  ;;  %v93_v6 = vshll.u32 %v2124_v4, %v78_v53  ;;  %vm96_vm2 = vcmp.lt.s32.totalorder %v77_v56, 1  ;;  %vm99_vm3 = vcmp.lt.s32.totalorder %v77_v56, 4 }
  0xb9   :  { %v82_v61 = vshrl.u32 %v2121_v59, %v79_v55  ;;  %v85_v63 = vshrl.u32 %v2122_v62, %v79_v55  ;;  %v88_v2 = vshrl.u32 %v2123_v1, %v79_v55  ;;  %v91_v5 = vshrl.u32 %v2124_v4, %v79_v55 }
  0xba   :  { %v94_v8 = vshrl.u32 %v2125_v7, %v79_v55  ;;  %v80_v18 = vshrl.u32 %v2120_v57, %v79_v55  ;;  %vm98_vm4 = vcmp.lt.s32.totalorder %v77_v56, 3  ;;  %vm97_vm5 = vcmp.lt.s32.totalorder %v77_v56, 2 }
  0xbb   :  { %v83_v10 = vor.u32 %v82_v61, %v81_v58  ;;  %v86_v11 = vor.u32 %v85_v63, %v84_v60  ;;  %v89_v12 = vor.u32 %v88_v2, %v87_v0  ;;  %v92_v13 = vor.u32 %v91_v5, %v90_v3 }
  0xbc   :  { %v95_v14 = vor.u32 %v94_v8, %v93_v6 }
  0xbd   :  { %v101_v15 = vsel %vm99_vm3, %v89_v12, 2102212464  ;;  %v104_v16 = vsel %vm96_vm2, %v83_v10, %v86_v11  ;;  %v108_v17 = vsel %vm96_vm2, %v86_v11, %v89_v12  ;;  %v105_v19 = vsel %vm99_vm3, %v92_v13, 920167782 }
  0xbe   :  { %v109_v20 = vsel %vm99_vm3, %v95_v14, 1326507024  ;;  %v106_v21 = vsel %vm98_vm4, %v89_v12, %v105_v19  ;;  %v100_v24 = vsel %vm96_vm2, %v80_v18, %v83_v10  ;;  %v102_v25 = vsel %vm98_vm4, %v86_v11, %v101_v15  ;;  %v1829_v19 = vld [vmem:[#allocation5] ss:$16 sps:$4 sm:$0xff]  }
  0xbf   :  { %v110_v22 = vsel %vm98_vm4, %v92_v13, %v109_v20  ;;  %v107_v26 = vsel %vm97_vm5, %v104_v16, %v106_v21  ;;  %v103_v32 = vsel %vm97_vm5, %v100_v24, %v102_v25  ;;  %v1832_v20 = vld [vmem:[#allocation5 + $0x8] ss:$16 sps:$4 sm:$0xff]   ;;  %v1835_v24 = vld [vmem:[#allocation5 + $0x20] ss:$16 sps:$4 sm:$0xff]  }
  0xc0   :  { %v111_v27 = vsel %vm97_vm5, %v108_v17, %v110_v22  ;;  %v2196_v30 = vmul.u32.u64.low %v112_v23, %v107_v26  ;;  %v2197_v31 = vmul.u32.u64.high %v112_v23, %v107_v26, %v2196_v30  ;;  %v119_v34 = vmul.u32 %v112_v23, %v103_v32  ;;  %v1837_v22 = vld [vmem:[#allocation5 + $0x24] ss:$16 sps:$4 sm:$0xff]   ;;  %v1838_v25 = vld [vmem:[#allocation5 + $0x28] ss:$16 sps:$4 sm:$0xff]   ;;  %v1846_v26 = vld [vmem:[#allocation5 + $0x4c] ss:$16 sps:$4 sm:$0xff]  }
  0xc1   :  { %v2193_v28 = vmul.u32.u64.low %v112_v23, %v111_v27  ;;  %v2194_v29 = vmul.u32.u64.high %v112_v23, %v111_v27, %v2193_v28  ;;  %v1840_v23 = vld [vmem:[#allocation5 + $0x2c] ss:$16 sps:$4 sm:$0xff]   ;;  %v1841_v27 = vld [vmem:[#allocation5 + $0x40] ss:$16 sps:$4 sm:$0xff]   ;;  %v1855_v32 = vld [vmem:[#allocation5 + $0x84] ss:$16 sps:$4 sm:$0xff]  }
  0xc2   :  { %v122_v33 = vadd.s32 1, %v2197_v31  ;;  %v1849_v28 = vld [vmem:[#allocation5 + $0x64] ss:$16 sps:$4 sm:$0xff]  }
  0xc3   :  { %vm121_vm6 = vc.u32 %v2194_v29, %v2196_v30  ;;  %v120_v49 = vadd.s32 %v2196_v30, %v2194_v29  ;;  %v1852_v29 = vld [vmem:[#allocation5 + $0x6c] ss:$16 sps:$4 sm:$0xff]   ;;  %v1847_v30 = vld [vmem:[#allocation5 + $0x60] ss:$16 sps:$4 sm:$0xff]  }
  0xc4   :  { %v123_v35 = vsel %vm121_vm6, %v122_v33, %v2197_v31  ;;  %v1850_v31 = vld [vmem:[#allocation5 + $0x68] ss:$16 sps:$4 sm:$0xff]   ;;  %v1858_v33 = vld [vmem:[#allocation5 + $0x8c] ss:$16 sps:$4 sm:$0xff]  }
  0xc5   :  { %v124_v37 = vadd.s32 %v123_v35, %v119_v34  ;;  %v1853_v34 = vld [vmem:[#allocation5 + $0x80] ss:$16 sps:$4 sm:$0xff]   ;;  %v1856_v35 = vld [vmem:[#allocation5 + $0x88] ss:$16 sps:$4 sm:$0xff]  }
  0xc7   :  { %v125_v39 = vadd.s32 536870912, %v124_v37 }
  0xc9   :  { %v126_v40 = vshrl.u32 %v125_v39, 30  ;;  %v1864_v39 = vld [vmem:[#allocation5 + $0xac] ss:$16 sps:$4 sm:$0xff]  }
  0xcb   :  { %v127_v41 = vshll.u32 %v126_v40, 30  ;;  %v150_v62 = vsub.s32 4, %v126_v40 }
  0xcd   :  { %v128_v42 = vsub.s32 %v124_v37, %v127_v41  ;;  %v151_v1 = vsel %vm66_vm8, %v150_v62, %v126_v40  ;;  %v1861_v37 = vld [vmem:[#allocation5 + $0xa4] ss:$16 sps:$4 sm:$0xff]   ;;  %v1859_v40 = vld [vmem:[#allocation5 + $0xa0] ss:$16 sps:$4 sm:$0xff]   ;;  %v1862_v41 = vld [vmem:[#allocation5 + $0xa8] ss:$16 sps:$4 sm:$0xff]  }
  0xce   :  { %v153_v3 = vsel %vm65_vm9, 0, %v151_v1  ;;  %v1889_v62 = vld [vmem:[#allocation5 + $0x140] ss:$16 sps:$4 sm:$0xff]   ;;  %v1900_v1 = vld [vmem:[#allocation5 + $0x16c] ss:$16 sps:$4 sm:$0xff]  }
  0xcf   :  { %v130_v43 = vsub.s32 0, %v128_v42  ;;  %v157_v4 = vadd.s32 3, %v153_v3  ;;  %v261_v6 = vand.u32 3, %v153_v3  ;;  %v1898_v3 = vld [vmem:[#allocation5 + $0x168] ss:$16 sps:$4 sm:$0xff]  }
  0xd1   :  { %v1580_v44 = vmin.u32 %v130_v43, %v128_v42  ;;  %v158_v5 = vand.u32 3, %v157_v4  ;;  %vm266_vm11 = vcmp.eq.s32.totalorder %v261_v6, 2  ;;  %vm263_vm13 = vcmp.eq.s32.totalorder %v261_v6, 0  ;;  %v1870_v43 = vld [vmem:[#allocation5 + $0xcc] ss:$16 sps:$4 sm:$0xff]  }
  0xd2   :  { %vm262_vm15 = vcmp.lt.s32.totalorder %v261_v6, 2  ;;  %v1903_v4 = vld [vmem:[#allocation5 + $0x184] ss:$16 sps:$4 sm:$0xff]   ;;  %v1901_v6 = vld [vmem:[#allocation5 + $0x180] ss:$16 sps:$4 sm:$0xff]  }
  0xd3   :  { %v132_v45 = vclz %v1580_v44  ;;  %vm163_vm10 = vcmp.eq.s32.totalorder %v158_v5, 2  ;;  %vm160_vm12 = vcmp.eq.s32.totalorder %v158_v5, 0  ;;  %vm159_vm14 = vcmp.lt.s32.totalorder %v158_v5, 2  ;;  %v1865_v44 = vld [vmem:[#allocation5 + $0xc0] ss:$16 sps:$4 sm:$0xff]  }
  0xd4   :  { %v1906_v5 = vld [vmem:[#allocation5 + $0x18c] ss:$16 sps:$4 sm:$0xff]  }
  0xd5   :  { %v1581_v47 = vadd.s32 4294967294, %v132_v45  ;;  %v1868_v45 = vld [vmem:[#allocation5 + $0xc8] ss:$16 sps:$4 sm:$0xff]  }
  0xd7   :  { %vm1582_vm7 = vcmp.lt.s32.totalorder %v1581_v47, 0 }
  0xd8   :  { %v135_v48 = vsel %vm1582_vm7, 0, %v1581_v47  ;;  %v1873_v47 = vld [vmem:[#allocation5 + $0xe4] ss:$16 sps:$4 sm:$0xff]  }
  0xd9   :  { %v136_v50 = vsub.s32 32, %v135_v48  ;;  %v140_v52 = vsub.s32 4294967266, %v135_v48  ;;  %v137_v53 = vshll.u32 %v128_v42, %v135_v48  ;;  %v1867_v42 = vld [vmem:[#allocation5 + $0xc4] ss:$16 sps:$4 sm:$0xff]   ;;  %v1876_v48 = vld [vmem:[#allocation5 + $0xec] ss:$16 sps:$4 sm:$0xff]  }
  0xdb   :  { %v138_v54 = vshrl.u32 %v120_v49, %v136_v50  ;;  %v141_v55 = vadd.s32 127, %v140_v52  ;;  %v1871_v49 = vld [vmem:[#allocation5 + $0xe0] ss:$16 sps:$4 sm:$0xff]   ;;  %v1874_v50 = vld [vmem:[#allocation5 + $0xe8] ss:$16 sps:$4 sm:$0xff]  }
  0xdc   :  { %v1879_v52 = vld [vmem:[#allocation5 + $0x104] ss:$16 sps:$4 sm:$0xff]  }
  0xdd   :  { %v139_v56 = vor.u32 %v138_v54, %v137_v53  ;;  %v142_v57 = vshll.u32 %v141_v55, 23  ;;  %v1882_v53 = vld [vmem:[#allocation5 + $0x10c] ss:$16 sps:$4 sm:$0xff]   ;;  %v1877_v54 = vld [vmem:[#allocation5 + $0x100] ss:$16 sps:$4 sm:$0xff]  }
  0xde   :  { %v1880_v55 = vld [vmem:[#allocation5 + $0x108] ss:$16 sps:$4 sm:$0xff]  }
  0xdf   :  { %v143_v58 = vor.u32 4788187, %v142_v57  ;;  %v146_v60 = vcvt.s32.f32 %v139_v56  ;;  %v1885_v56 = vld [vmem:[#allocation5 + $0x124] ss:$16 sps:$4 sm:$0xff]   ;;  %v1888_v57 = vld [vmem:[#allocation5 + $0x12c] ss:$16 sps:$4 sm:$0xff]  }
  0xe1   :  { %v144_v59 = vand.u32 2147483647, %v143_v58  ;;  %v1883_v58 = vld [vmem:[#allocation5 + $0x120] ss:$16 sps:$4 sm:$0xff]  }
  0xe3   :  { %v147_v61 = vmul.f32 %v146_v60, %v144_v59  ;;  %v1886_v59 = vld [vmem:[#allocation5 + $0x128] ss:$16 sps:$4 sm:$0xff]   ;;  %v1891_v60 = vld [vmem:[#allocation5 + $0x144] ss:$16 sps:$4 sm:$0xff]  }
  0xe5   :  { %v148_v63 = vxor.u32 2147483648, %v147_v61 }
  0xe7   :  { %v149_v0 = vsel %vm66_vm8, %v148_v63, %v147_v61  ;;  %v1894_v61 = vld [vmem:[#allocation5 + $0x14c] ss:$16 sps:$4 sm:$0xff]   ;;  %v1892_v63 = vld [vmem:[#allocation5 + $0x148] ss:$16 sps:$4 sm:$0xff]  }
  0xe8   :  { %v152_v2 = vsel %vm65_vm9, %v2187_v46, %v149_v0  ;;  %v1843_v46 = vld [vmem:[#allocation5 + $0x44] ss:$16 sps:$4 sm:$0xff]  }
  0xe9   :  { %2023 = vcosq.f32 %v152_v2  ;;  %v1897_v0 = vld [vmem:[#allocation5 + $0x164] ss:$16 sps:$4 sm:$0xff]  }
  0xea   :  { %2025 = vsinq.f32 %v152_v2  ;;  %v1895_v2 = vld [vmem:[#allocation5 + $0x160] ss:$16 sps:$4 sm:$0xff]  }
  0xf3   :  { %v2024_v7 = vpop.eup %2023 }
  0xf4   :  { %v2026_v8 = vpop.eup %2025  ;;  %v164_v9 = vxor.u32 2147483648, %v2024_v7 }
  0xf5   :  { %v161_v10 = vxor.u32 2147483648, %v2026_v8 }
  0xf6   :  { %v165_v11 = vsel %vm163_vm10, %v164_v9, %v2026_v8  ;;  %v268_v51 = vsel %vm266_vm11, %v164_v9, %v2026_v8  ;;  %v1909_v8 = vld [vmem:[#allocation5 + $0x1a4] ss:$16 sps:$4 sm:$0xff]   ;;  %v1912_v9 = vld [vmem:[#allocation5 + $0x1ac] ss:$16 sps:$4 sm:$0xff]  }
  0xf7   :  { %v162_v12 = vsel %vm160_vm12, %v2024_v7, %v161_v10  ;;  %v265_v13 = vsel %vm263_vm13, %v2024_v7, %v161_v10  ;;  %v1904_v7 = vld [vmem:[#allocation5 + $0x188] ss:$16 sps:$4 sm:$0xff]   ;;  %v1907_v10 = vld [vmem:[#allocation5 + $0x1a0] ss:$16 sps:$4 sm:$0xff]  }
  0xf8   :  { %v166_v14 = vsel %vm159_vm14, %v162_v12, %v165_v11  ;;  %v269_v15 = vsel %vm262_vm15, %v265_v13, %v268_v51  ;;  %v1910_v11 = vld [vmem:[#allocation5 + $0x1a8] ss:$16 sps:$4 sm:$0xff]   ;;  %v1915_v51 = vld [vmem:[#allocation5 + $0x1c4] ss:$16 sps:$4 sm:$0xff]   ;;  %v1918_v12 = vld [vmem:[#allocation5 + $0x1cc] ss:$16 sps:$4 sm:$0xff]  }
  0xf9   :  { %v167_v16 = vsel %vm156_vm1, nan, %v166_v14  ;;  %v270_v17 = vsel %vm156_vm1, nan, %v269_v15  ;;  %v1913_v13 = vld [vmem:[#allocation5 + $0x1c0] ss:$16 sps:$4 sm:$0xff]   ;;  %v1916_v14 = vld [vmem:[#allocation5 + $0x1c8] ss:$16 sps:$4 sm:$0xff]  }
  0xfa   :  { %v273_v18 = vsel %vm51_vm0, %v167_v16, %v270_v17  ;;  %v1921_v15 = vld [vmem:[#allocation5 + $0x1e4] ss:$16 sps:$4 sm:$0xff]   ;;  %v1924_v16 = vld [vmem:[#allocation5 + $0x1ec] ss:$16 sps:$4 sm:$0xff]   ;;  %v1919_v17 = vld [vmem:[#allocation5 + $0x1e0] ss:$16 sps:$4 sm:$0xff]  }
  0xfb   :  { %v274_v21 = vpack.c.bf16 %v273_v18, %v273_v18  ;;  %v1922_v18 = vld [vmem:[#allocation5 + $0x1e8] ss:$16 sps:$4 sm:$0xff]  }
  0xfd   :  { %524 = vmatmul.mubr.bf16.vlgmr.msra.gmra.mrb[0].mxu0 %v274_v21  ;;  %565 = vmatmul.mubr.bf16.vlgmr.msra.gmra.mrb[0].mxu1 %v274_v21  ;;  %v2211_v21 = vshrl.u32 %v49_v36, 7 }
  0xfe   :  { %1395 = vmatpush1.bf16.msra.mxu0 %v1829_v19  ;;  %1477 = vmatpush1.bf16.msra.mxu1 %v1832_v20  ;;  %v1927_v19 = vld [vmem:[#allocation5 + $0x204] ss:$16 sps:$4 sm:$0xff]   ;;  %v1930_v20 = vld [vmem:[#allocation5 + $0x20c] ss:$16 sps:$4 sm:$0xff]  }
  0xff   :  { %1396 = vmatprep.subr.bf16.mxu0 %v1837_v22  ;;  %1478 = vmatprep.subr.bf16.mxu1 %v1840_v23  ;;  %v313_v22 = vsub.s32 0, %v2211_v21  ;;  %v2217_v23 = vld [vmem:[%s2266_s2] ss:$2 sm:$0xf] }
 0x102   :  { %1397 = vmatpush1.bf16.msra.mxu0 %v1835_v24  ;;  %1479 = vmatpush1.bf16.msra.mxu1 %v1838_v25  ;;  %v317_v24 = vsub.s32 1, %v2211_v21  ;;  %v325_v25 = vsub.s32 3, %v2211_v21 }
 0x103   :  { %1398 = vmatprep.subr.bf16.mxu0 %v1843_v46  ;;  %1480 = vmatprep.subr.bf16.mxu1 %v1846_v26  ;;  %v314_v46 = vrot.slane %v2217_v23, %v313_v22 }
 0x104   :  { %v318_v36 = vrot.slane %v2217_v23, %v317_v24  ;;  %v326_v26 = vrot.slane %v2217_v23, %v325_v25 }
 0x106   :  { %1399 = vmatpush1.bf16.msra.mxu0 %v1841_v27  ;;  %1481 = vmatpush1.bf16.msra.mxu1 %v1844_v38 }
 0x107   :  { %1400 = vmatprep.subr.bf16.mxu0 %v1849_v28  ;;  %1482 = vmatprep.subr.bf16.mxu1 %v1852_v29 }
 0x10a   :  { %1401 = vmatpush1.bf16.msra.mxu0 %v1847_v30  ;;  %1483 = vmatpush1.bf16.msra.mxu1 %v1850_v31 }
 0x10b   :  { %1402 = vmatprep.subr.bf16.mxu0 %v1855_v32  ;;  %1484 = vmatprep.subr.bf16.mxu1 %v1858_v33 }
 0x10e   :  { %1403 = vmatpush1.bf16.msra.mxu0 %v1853_v34  ;;  %1485 = vmatpush1.bf16.msra.mxu1 %v1856_v35 }
 0x10f   :  { %1404 = vmatprep.subr.bf16.mxu0 %v1861_v37  ;;  %1486 = vmatprep.subr.bf16.mxu1 %v1864_v39 }
 0x112   :  { %1405 = vmatpush1.bf16.msra.mxu0 %v1859_v40  ;;  %1487 = vmatpush1.bf16.msra.mxu1 %v1862_v41 }
 0x113   :  { %1406 = vmatprep.subr.bf16.mxu0 %v1867_v42  ;;  %1488 = vmatprep.subr.bf16.mxu1 %v1870_v43 }
 0x116   :  { %1407 = vmatpush1.bf16.msra.mxu0 %v1865_v44  ;;  %1489 = vmatpush1.bf16.msra.mxu1 %v1868_v45 }
 0x117   :  { %1408 = vmatprep.subr.bf16.mxu0 %v1873_v47  ;;  %1490 = vmatprep.subr.bf16.mxu1 %v1876_v48 }
 0x11a   :  { %1409 = vmatpush1.bf16.msra.mxu0 %v1871_v49  ;;  %1491 = vmatpush1.bf16.msra.mxu1 %v1874_v50 }
 0x11b   :  { %1410 = vmatprep.subr.bf16.mxu0 %v1879_v52  ;;  %1492 = vmatprep.subr.bf16.mxu1 %v1882_v53 }
 0x11e   :  { %1411 = vmatpush1.bf16.msra.mxu0 %v1877_v54  ;;  %1493 = vmatpush1.bf16.msra.mxu1 %v1880_v55 }
 0x11f   :  { %1412 = vmatprep.subr.bf16.mxu0 %v1885_v56  ;;  %1494 = vmatprep.subr.bf16.mxu1 %v1888_v57  ;;  %v1925_v57 = vld [vmem:[#allocation5 + $0x200] ss:$16 sps:$4 sm:$0xff]  }
 0x122   :  { %1413 = vmatpush1.bf16.msra.mxu0 %v1883_v58  ;;  %1495 = vmatpush1.bf16.msra.mxu1 %v1886_v59  ;;  %v1928_v58 = vld [vmem:[#allocation5 + $0x208] ss:$16 sps:$4 sm:$0xff]  }
 0x123   :  { %1414 = vmatprep.subr.bf16.mxu0 %v1891_v60  ;;  %1496 = vmatprep.subr.bf16.mxu1 %v1894_v61  ;;  %v1933_v60 = vld [vmem:[#allocation5 + $0x224] ss:$16 sps:$4 sm:$0xff]   ;;  %v1936_v61 = vld [vmem:[#allocation5 + $0x22c] ss:$16 sps:$4 sm:$0xff]  }
 0x126   :  { %1415 = vmatpush1.bf16.msra.mxu0 %v1889_v62  ;;  %1497 = vmatpush1.bf16.msra.mxu1 %v1892_v63  ;;  %v1931_v63 = vld [vmem:[#allocation5 + $0x220] ss:$16 sps:$4 sm:$0xff]  }
 0x127   :  { %1416 = vmatprep.subr.bf16.mxu0 %v1897_v0  ;;  %1498 = vmatprep.subr.bf16.mxu1 %v1900_v1  ;;  %v1934_v0 = vld [vmem:[#allocation5 + $0x228] ss:$16 sps:$4 sm:$0xff]   ;;  %v1939_v1 = vld [vmem:[#allocation5 + $0x244] ss:$16 sps:$4 sm:$0xff]  }
 0x12a   :  { %1417 = vmatpush1.bf16.msra.mxu0 %v1895_v2  ;;  %1499 = vmatpush1.bf16.msra.mxu1 %v1898_v3  ;;  %v1942_v2 = vld [vmem:[#allocation5 + $0x24c] ss:$16 sps:$4 sm:$0xff]   ;;  %v1937_v3 = vld [vmem:[#allocation5 + $0x240] ss:$16 sps:$4 sm:$0xff]  }
 0x12b   :  { %1418 = vmatprep.subr.bf16.mxu0 %v1903_v4  ;;  %1500 = vmatprep.subr.bf16.mxu1 %v1906_v5  ;;  %v1940_v4 = vld [vmem:[#allocation5 + $0x248] ss:$16 sps:$4 sm:$0xff]   ;;  %v1945_v5 = vld [vmem:[#allocation5 + $0x264] ss:$16 sps:$4 sm:$0xff]  }
 0x12e   :  { %1419 = vmatpush1.bf16.msra.mxu0 %v1901_v6  ;;  %1501 = vmatpush1.bf16.msra.mxu1 %v1904_v7  ;;  %v1948_v6 = vld [vmem:[#allocation5 + $0x26c] ss:$16 sps:$4 sm:$0xff]   ;;  %v1943_v7 = vld [vmem:[#allocation5 + $0x260] ss:$16 sps:$4 sm:$0xff]  }
 0x12f   :  { %1420 = vmatprep.subr.bf16.mxu0 %v1909_v8  ;;  %1502 = vmatprep.subr.bf16.mxu1 %v1912_v9  ;;  %v1946_v8 = vld [vmem:[#allocation5 + $0x268] ss:$16 sps:$4 sm:$0xff]   ;;  %v1951_v9 = vld [vmem:[#allocation5 + $0x284] ss:$16 sps:$4 sm:$0xff]  }
 0x132   :  { %1421 = vmatpush1.bf16.msra.mxu0 %v1907_v10  ;;  %1503 = vmatpush1.bf16.msra.mxu1 %v1910_v11  ;;  %v1954_v10 = vld [vmem:[#allocation5 + $0x28c] ss:$16 sps:$4 sm:$0xff]   ;;  %v321_v11 = vsub.s32 2, %v2211_v21 }
 0x133   :  { %1422 = vmatprep.subr.bf16.mxu0 %v1915_v51  ;;  %1504 = vmatprep.subr.bf16.mxu1 %v1918_v12  ;;  %v1949_v51 = vld [vmem:[#allocation5 + $0x280] ss:$16 sps:$4 sm:$0xff]   ;;  %v1952_v12 = vld [vmem:[#allocation5 + $0x288] ss:$16 sps:$4 sm:$0xff]  }
 0x136   :  { %1423 = vmatpush1.bf16.msra.mxu0 %v1913_v13  ;;  %1505 = vmatpush1.bf16.msra.mxu1 %v1916_v14  ;;  %v1957_v13 = vld [vmem:[#allocation5 + $0x2a4] ss:$16 sps:$4 sm:$0xff]   ;;  %v1960_v14 = vld [vmem:[#allocation5 + $0x2ac] ss:$16 sps:$4 sm:$0xff]  }
 0x137   :  { %1424 = vmatprep.subr.bf16.mxu0 %v1921_v15  ;;  %1506 = vmatprep.subr.bf16.mxu1 %v1924_v16  ;;  %v322_v15 = vrot.slane %v2217_v23, %v321_v11  ;;  %v1955_v16 = vld [vmem:[#allocation5 + $0x2a0] ss:$16 sps:$4 sm:$0xff]  }
 0x13a   :  { %1425 = vmatpush1.bf16.msra.mxu0 %v1919_v17  ;;  %1507 = vmatpush1.bf16.msra.mxu1 %v1922_v18  ;;  %v1958_v17 = vld [vmem:[#allocation5 + $0x2a8] ss:$16 sps:$4 sm:$0xff]   ;;  %v1963_v18 = vld [vmem:[#allocation5 + $0x2c4] ss:$16 sps:$4 sm:$0xff]  }
 0x13b   :  { %1435 = vmatprep.subr.bf16.mxu0 %v1927_v19  ;;  %1517 = vmatprep.subr.bf16.mxu1 %v1930_v20  ;;  %v1966_v19 = vld [vmem:[#allocation5 + $0x2cc] ss:$16 sps:$4 sm:$0xff]  }
 0x1d0   :  { %v525_v27 = vpop.f32.mrb[0].mxu0  ;;  %v2230_v38 = vpop.f32.mrb[0].mxu1 }
 0x1d1   :  { %v526_v28 = vadd.f32 %v525_v27, %v314_v46  ;;  %v527_v29 = vpop.f32.mrb[1].mxu0  ;;  %v568_v30 = vpop.f32.mrb[1].mxu1  ;;  %v2237_v20 = vadd.f32 %v2230_v38, %v322_v15  ;;  %v1961_v46 = vld [vmem:[#allocation5 + $0x2c0] ss:$16 sps:$4 sm:$0xff]   ;;  %v1972_v27 = vld [vmem:[#allocation5 + $0x2ec] ss:$16 sps:$4 sm:$0xff]  }
 0x1d2   :  { %v528_v31 = vadd.f32 %v527_v29, %v318_v36  ;;  %v569_v32 = vadd.f32 %v568_v30, %v326_v26  ;;  %v529_v33 = vpop.f32.mrb[2].mxu0  ;;  %v570_v34 = vpop.f32.mrb[2].mxu1  ;;  %v1964_v36 = vld [vmem:[#allocation5 + $0x2c8] ss:$16 sps:$4 sm:$0xff]   ;;  %v1969_v26 = vld [vmem:[#allocation5 + $0x2e4] ss:$16 sps:$4 sm:$0xff]  }
 0x1d3   :  { %v1620_v35 = vmul.f32 -1.442695, %v526_v28  ;;  %v530_v37 = vpop.f32.mrb[3].mxu0  ;;  %v571_v39 = vpop.f32.mrb[3].mxu1  ;;  %v1622_v23 = vmul.f32 -1.442695, %v2237_v20 }
 0x1d4   :  { %v1621_v40 = vmul.f32 -1.442695, %v528_v31  ;;  %v1623_v41 = vmul.f32 -1.442695, %v569_v32  ;;  %v1970_v29 = vld [vmem:[#allocation5 + $0x2e8] ss:$16 sps:$4 sm:$0xff]  }
 0x1d5   :  { %2027 = vpow2.f32 %v1620_v35  ;;  %v1975_v30 = vld [vmem:[#allocation5 + $0x304] ss:$16 sps:$4 sm:$0xff]   ;;  %v1973_v38 = vld [vmem:[#allocation5 + $0x300] ss:$16 sps:$4 sm:$0xff]   ;;  %v1984_v34 = vld [vmem:[#allocation5 + $0x32c] ss:$16 sps:$4 sm:$0xff]  }
 0x1d6   :  { %2029 = vpow2.f32 %v1621_v40  ;;  %v1981_v33 = vld [vmem:[#allocation5 + $0x324] ss:$16 sps:$4 sm:$0xff]   ;;  %v1979_v35 = vld [vmem:[#allocation5 + $0x320] ss:$16 sps:$4 sm:$0xff]   ;;  %v1982_v37 = vld [vmem:[#allocation5 + $0x328] ss:$16 sps:$4 sm:$0xff]  }
 0x1d7   :  { %2031 = vpow2.f32 %v1623_v41  ;;  %v1987_v39 = vld [vmem:[#allocation5 + $0x344] ss:$16 sps:$4 sm:$0xff]   ;;  %v1990_v40 = vld [vmem:[#allocation5 + $0x34c] ss:$16 sps:$4 sm:$0xff]   ;;  %v1985_v41 = vld [vmem:[#allocation5 + $0x340] ss:$16 sps:$4 sm:$0xff]  }
 0x1df   :  { %v2028_v42 = vpop.eup %2027 }
 0x1e0   :  { %v585_v43 = vadd.f32 1.0, %v2028_v42  ;;  %v2030_v44 = vpop.eup %2029  ;;  %v1988_v42 = vld [vmem:[#allocation5 + $0x348] ss:$16 sps:$4 sm:$0xff]  }
 0x1e1   :  { %v2032_v45 = vpop.eup %2031  ;;  %v586_v47 = vadd.f32 1.0, %v2030_v44  ;;  %v1993_v44 = vld [vmem:[#allocation5 + $0x364] ss:$16 sps:$4 sm:$0xff]  }
 0x1e2   :  { %2033 = vrcp.f32 %v585_v43  ;;  %v588_v48 = vadd.f32 1.0, %v2032_v45  ;;  %v1996_v45 = vld [vmem:[#allocation5 + $0x36c] ss:$16 sps:$4 sm:$0xff]  }
 0x1e3   :  { %2035 = vrcp.f32 %v586_v47 }
 0x1e4   :  { %2037 = vrcp.f32 %v588_v48  ;;  %v1991_v48 = vld [vmem:[#allocation5 + $0x360] ss:$16 sps:$4 sm:$0xff]  }
 0x1e5   :  { %2039 = vpow2.f32 %v1622_v23 }
 0x1ec   :  { %v2034_v49 = vpop.eup %2033 }
 0x1ed   :  { %v2036_v50 = vpop.eup %2035  ;;  %v597_v52 = vmul.f32 %v2034_v49, %v526_v28  ;;  %v1967_v28 = vld [vmem:[#allocation5 + $0x2e0] ss:$16 sps:$4 sm:$0xff]   ;;  %v1994_v49 = vld [vmem:[#allocation5 + $0x368] ss:$16 sps:$4 sm:$0xff]  }
 0x1ee   :  { %v2038_v53 = vpop.eup %2037  ;;  %v598_v54 = vmul.f32 %v2036_v50, %v528_v31  ;;  %v1978_v31 = vld [vmem:[#allocation5 + $0x30c] ss:$16 sps:$4 sm:$0xff]   ;;  %v1999_v50 = vld [vmem:[#allocation5 + $0x384] ss:$16 sps:$4 sm:$0xff]  }
 0x1ef   :  { %v600_v55 = vmul.f32 %v2038_v53, %v569_v32  ;;  %v601_v59 = vpack.c.bf16 %v597_v52, %v597_v52  ;;  %v1976_v32 = vld [vmem:[#allocation5 + $0x308] ss:$16 sps:$4 sm:$0xff]   ;;  %v2040_v43 = vpop.eup %2039  ;;  %v2002_v52 = vld [vmem:[#allocation5 + $0x38c] ss:$16 sps:$4 sm:$0xff]   ;;  %v1997_v53 = vld [vmem:[#allocation5 + $0x380] ss:$16 sps:$4 sm:$0xff]  }
 0x1f0   :  { %v602_v56 = vpack.c.bf16 %v598_v54, %v598_v54  ;;  %v587_v47 = vadd.f32 1.0, %v2040_v43  ;;  %v2000_v54 = vld [vmem:[#allocation5 + $0x388] ss:$16 sps:$4 sm:$0xff]  }
 0x1f1   :  { %v604_v62 = vpack.c.bf16 %v600_v55, %v600_v55  ;;  %v2005_v55 = vld [vmem:[#allocation5 + $0x3a4] ss:$16 sps:$4 sm:$0xff]  }
 0x1f2   :  { %1426 = vmatprep.mubr.bf16.mxu0 %v602_v56  ;;  %1508 = vmatprep.mubr.bf16.mxu1 %v602_v56  ;;  %2041 = vrcp.f32 %v587_v47  ;;  %v2008_v56 = vld [vmem:[#allocation5 + $0x3ac] ss:$16 sps:$4 sm:$0xff]  }
 0x1f3   :  { %1427 = vmatmul.mubr.bf16.vlgmr.msra.gmra.mrb[4].mxu0 %v601_v59  ;;  %1509 = vmatmul.mubr.bf16.vlgmr.msra.gmra.mrb[4].mxu1 %v601_v59  ;;  %v2011_v59 = vld [vmem:[#allocation5 + $0x3c4] ss:$16 sps:$4 sm:$0xff]  }
 0x1f4   :  { %1436 = vmatpush1.bf16.msra.mxu0 %v1925_v57  ;;  %1518 = vmatpush1.bf16.msra.mxu1 %v1928_v58  ;;  %v2003_v57 = vld [vmem:[#allocation5 + $0x3a0] ss:$16 sps:$4 sm:$0xff]   ;;  %v2006_v58 = vld [vmem:[#allocation5 + $0x3a8] ss:$16 sps:$4 sm:$0xff]  }
 0x1f5   :  { %1467 = vmatprep.mubr.bf16.mxu0 %v604_v62  ;;  %1549 = vmatprep.mubr.bf16.mxu1 %v604_v62  ;;  %v2012_v62 = vld [vmem:[#allocation5 + $0x3c8] ss:$16 sps:$4 sm:$0xff]  }
 0x1f6   :  { %1437 = vmatprep.subr.bf16.mxu0 %v1933_v60  ;;  %1519 = vmatprep.subr.bf16.mxu1 %v1936_v61  ;;  %v2014_v60 = vld [vmem:[#allocation5 + $0x3cc] ss:$16 sps:$4 sm:$0xff]   ;;  %v2009_v61 = vld [vmem:[#allocation5 + $0x3c0] ss:$16 sps:$4 sm:$0xff]  }
 0x1f8   :  { %1438 = vmatpush1.bf16.msra.mxu0 %v1931_v63  ;;  %1520 = vmatpush1.bf16.msra.mxu1 %v1934_v0  ;;  %v2017_v63 = vld [vmem:[#allocation5 + $0x3e4] ss:$16 sps:$4 sm:$0xff]   ;;  %v2020_v0 = vld [vmem:[#allocation5 + $0x3ec] ss:$16 sps:$4 sm:$0xff]  }
 0x1f9   :  { %1439 = vmatprep.subr.bf16.mxu0 %v1939_v1  ;;  %1521 = vmatprep.subr.bf16.mxu1 %v1942_v2  ;;  %v2015_v2 = vld [vmem:[#allocation5 + $0x3e0] ss:$16 sps:$4 sm:$0xff]  }
 0x1fc   :  { %1440 = vmatpush1.bf16.msra.mxu0 %v1937_v3  ;;  %1522 = vmatpush1.bf16.msra.mxu1 %v1940_v4  ;;  %v2042_v1 = vpop.eup %2041  ;;  %v2018_v3 = vld [vmem:[#allocation5 + $0x3e8] ss:$16 sps:$4 sm:$0xff]  }
 0x1fd   :  { %1441 = vmatprep.subr.bf16.mxu0 %v1945_v5  ;;  %1523 = vmatprep.subr.bf16.mxu1 %v1948_v6  ;;  %v599_v4 = vmul.f32 %v2042_v1, %v2237_v20  ;;  %v1587_v6 = vld [vmem:[%s2266_s2 + $0x1] ss:$2 sm:$0xf]  ;;  %s2087_s2 = scalar_lea.vmem %s1569_s19, 512 }
 0x1fe   :  { %p2088_p2 = scmp.ne.s32.totalorder %s1569_s19, %s2087_s2  ;;  %p2093_p4 = scmp.lt.s32.totalorder %s2087_s2, %s2087_s2 }
 0x1ff   :  { %v603_v5 = vpack.c.bf16 %v599_v4, %v599_v4 }
 0x200   :  { %1442 = vmatpush1.bf16.msra.mxu0 %v1943_v7  ;;  %1524 = vmatpush1.bf16.msra.mxu1 %v1946_v8  ;;  %v737_v7 = vrot.slane %v1587_v6, %v313_v22  ;;  %v745_v8 = vrot.slane %v1587_v6, %v321_v11  ;;  %p2094_p5 = por %p2093_p4, %p2092_p3 }
 0x201   :  { %1443 = vmatprep.subr.bf16.mxu0 %v1951_v9  ;;  %1525 = vmatprep.subr.bf16.mxu1 %v1954_v10  ;;  %v741_v9 = vrot.slane %v1587_v6, %v317_v24  ;;  %v749_v10 = vrot.slane %v1587_v6, %v325_v25 }
 0x202   :  { %p2095_p6 = pnand %p2094_p5, %p2088_p2 }
 0x204   :  { %1444 = vmatpush1.bf16.msra.mxu0 %v1949_v51  ;;  %1526 = vmatpush1.bf16.msra.mxu1 %v1952_v12 }
 0x205   :  { %1445 = vmatprep.subr.bf16.mxu0 %v1957_v13  ;;  %1527 = vmatprep.subr.bf16.mxu1 %v1960_v14 }
 0x208   :  { %1446 = vmatpush1.bf16.msra.mxu0 %v1955_v16  ;;  %1528 = vmatpush1.bf16.msra.mxu1 %v1958_v17 }
 0x209   :  { %1447 = vmatprep.subr.bf16.mxu0 %v1963_v18  ;;  %1529 = vmatprep.subr.bf16.mxu1 %v1966_v19 }
 0x20c   :  { %1448 = vmatpush1.bf16.msra.mxu0 %v1961_v46  ;;  %1530 = vmatpush1.bf16.msra.mxu1 %v1964_v36 }
 0x20d   :  { %1449 = vmatprep.subr.bf16.mxu0 %v1969_v26  ;;  %1531 = vmatprep.subr.bf16.mxu1 %v1972_v27 }
 0x210   :  { %1450 = vmatpush1.bf16.msra.mxu0 %v1967_v28  ;;  %1532 = vmatpush1.bf16.msra.mxu1 %v1970_v29 }
 0x211   :  { %1451 = vmatprep.subr.bf16.mxu0 %v1975_v30  ;;  %1533 = vmatprep.subr.bf16.mxu1 %v1978_v31 }
 0x214   :  { %1452 = vmatpush1.bf16.msra.mxu0 %v1973_v38  ;;  %1534 = vmatpush1.bf16.msra.mxu1 %v1976_v32 }
 0x215   :  { %1453 = vmatprep.subr.bf16.mxu0 %v1981_v33  ;;  %1535 = vmatprep.subr.bf16.mxu1 %v1984_v34 }
 0x218   :  { %1454 = vmatpush1.bf16.msra.mxu0 %v1979_v35  ;;  %1536 = vmatpush1.bf16.msra.mxu1 %v1982_v37 }
 0x219   :  { %1455 = vmatprep.subr.bf16.mxu0 %v1987_v39  ;;  %1537 = vmatprep.subr.bf16.mxu1 %v1990_v40 }
 0x21c   :  { %1456 = vmatpush1.bf16.msra.mxu0 %v1985_v41  ;;  %1538 = vmatpush1.bf16.msra.mxu1 %v1988_v42 }
 0x21d   :  { %1457 = vmatprep.subr.bf16.mxu0 %v1993_v44  ;;  %1539 = vmatprep.subr.bf16.mxu1 %v1996_v45 }
 0x220   :  { %1458 = vmatpush1.bf16.msra.mxu0 %v1991_v48  ;;  %1540 = vmatpush1.bf16.msra.mxu1 %v1994_v49 }
 0x221   :  { %1459 = vmatprep.subr.bf16.mxu0 %v1999_v50  ;;  %1541 = vmatprep.subr.bf16.mxu1 %v2002_v52 }
 0x224   :  { %1460 = vmatpush1.bf16.msra.mxu0 %v1997_v53  ;;  %1542 = vmatpush1.bf16.msra.mxu1 %v2000_v54 }
 0x225   :  { %1461 = vmatprep.subr.bf16.mxu0 %v2005_v55  ;;  %1543 = vmatprep.subr.bf16.mxu1 %v2008_v56 }
 0x228   :  { %1462 = vmatpush1.bf16.msra.mxu0 %v2003_v57  ;;  %1544 = vmatpush1.bf16.msra.mxu1 %v2006_v58 }
 0x229   :  { %1463 = vmatprep.subr.bf16.mxu0 %v2011_v59  ;;  %1545 = vmatprep.subr.bf16.mxu1 %v2014_v60 }
 0x22c   :  { %1464 = vmatpush1.bf16.msra.mxu0 %v2009_v61  ;;  %1546 = vmatpush1.bf16.msra.mxu1 %v2012_v62 }
 0x22d   :  { %1465 = vmatprep.subr.bf16.mxu0 %v2017_v63  ;;  %1547 = vmatprep.subr.bf16.mxu1 %v2020_v0 }
 0x230   :  { %1466 = vmatpush1.bf16.msra.mxu0 %v2015_v2  ;;  %1548 = vmatpush1.bf16.msra.mxu1 %v2018_v3 }
 0x233   :  { %1468 = vmatmul.mubr.bf16.vlgmr.msra.gmra.mrb[4].mxu0 %v603_v5  ;;  %1550 = vmatmul.mubr.bf16.vlgmr.msra.gmra.mrb[4].mxu1 %v603_v5 }
 0x306   :  { %v1469_v51 = vpop.f32.mrb[4].mxu0  ;;  %v1551_v12 = vpop.f32.mrb[4].mxu1 }
 0x307   :  { %v1752_v13 = vadd.f32 %v1469_v51, %v737_v7  ;;  %v1754_v14 = vadd.f32 %v1551_v12, %v745_v8  ;;  %v1471_v15 = vpop.f32.mrb[5].mxu0  ;;  %v1553_v16 = vpop.f32.mrb[5].mxu1 }
 0x308   :  { %v1753_v17 = vadd.f32 %v1471_v15, %v741_v9  ;;  %v1755_v18 = vadd.f32 %v1553_v16, %v749_v10  ;;  %v1473_v22 = vpop.f32.mrb[6].mxu0  ;;  %v1555_v19 = vpop.f32.mrb[6].mxu1 }
 0x309   :  { %1558 = vst [vmem:[#allocation7] sm:$0xff] %v1752_v13  ;;  %1560 = vst [vmem:[#allocation7 + $0x10] sm:$0xff] %v1754_v14  ;;  %v1474_v11 = vpop.f32.mrb[7].mxu0  ;;  %v1556_v24 = vpop.f32.mrb[7].mxu1 }
 0x30a   :  { %1559 = vst [vmem:[#allocation7 + $0x8] sm:$0xff] %v1753_v17  ;;  %1561 = vst [vmem:[#allocation7 + $0x18] sm:$0xff] %v1755_v18 }
 0x30b   :  { %2098 = shalt.err (!%p2095_p6)
}
 0x30c   :  { %s2099_s22 = scalar_lea.hbm %s2268_s4, 512 }
 0x30d   :  { %p2100_p7 = scmp.ne.s32.totalorder %s2268_s4, %s2099_s22  ;;  %p2103_p8 = scmp.lt.u32.totalorder %s2099_s22, %s2268_s4 }
 0x30f   :  { %p2105_p9 = pnand %p2103_p8, %p2100_p7 }
 0x311   :  { %2108 = shalt.err (!%p2105_p9)
}
 0x312   :  { %1571 = dma.vmem_to_hbm [thread:$0]  %s1569_s19, 512, %s2268_s4, [#allocation4]  }
 0x313   :  { %2113 = dma.done.wait [#allocation4], 512  }
 0x314   :  { %2114 = vsyncadd [#allocation4], 4294966784 }
 0x315   :  { %1575 = vsyncpa [#allocation3], 1 }
 0x316   :  { %1576 = vsyncpa [#allocation6], 1 }
 0x317   :  { %1577 = vsyncpa [#allocation4], 1 }

</bundles_post_ra>
